<compile_context>
chip_gen: v7x
topology: tpu7x:2x2x1
jax: 0.10.0
libtpu: 0.0.40
codegen_flags: <defaults>
</compile_context>

<pallas_src>
import functools
import math

import jax
import jax.numpy as jnp
from jax.experimental import pallas as pl
from jax.experimental.pallas import tpu as pltpu


def _round_up(a, b):
    return (a + b - 1) // b * b


# ---------------------------------------------------------------------------
# Single fused Pallas kernel: the entire MLP forward for one tile of rows.
# ---------------------------------------------------------------------------
def _mlp_fused_kernel(*refs, n_layers):
    # refs = (x, t, w1x, w1t, b1, s1, sh1, [w_i, s_i, sh_i]*(n_layers-1),
    #         w_out, b_out, o_ref)
    x_ref, t_ref = refs[0], refs[1]
    w1x_ref, w1t_ref, b1_ref, s1_ref, sh1_ref = refs[2:7]
    o_ref = refs[-1]
    cdt = w1x_ref.dtype  # compute dtype for MXU operands (bf16)

    # Layer 1 (folded Conv1d(k=1) + BN0 + Linear): two matmuls + bias.
    h = (jnp.dot(x_ref[...].astype(cdt), w1x_ref[...],
                 preferred_element_type=jnp.float32)
         + jnp.dot(t_ref[...].astype(cdt), w1t_ref[...],
                   preferred_element_type=jnp.float32)
         + b1_ref[...])
    # LinBnDrop(lin_first=True): Linear -> ReLU -> BN -> Dropout(identity)
    h = jnp.maximum(h, 0.0) * s1_ref[...] + sh1_ref[...]

    idx = 7
    for _ in range(n_layers - 1):
        w_ref, s_ref, sh_ref = refs[idx], refs[idx + 1], refs[idx + 2]
        idx += 3
        h = jnp.dot(h.astype(cdt), w_ref[...], preferred_element_type=jnp.float32)
        h = jnp.maximum(h, 0.0) * s_ref[...] + sh_ref[...]

    # Final Linear with bias; output N is padded to a multiple of 128 so the
    # store is lane-dense.
    wout_ref, bout_ref = refs[idx], refs[idx + 1]
    o_ref[...] = (jnp.dot(h.astype(cdt), wout_ref[...],
                          preferred_element_type=jnp.float32) + bout_ref[...])


# ---------------------------------------------------------------------------
# Raw (PyTorch-like) parameters and the reference forward (plain JAX, f32).
# ---------------------------------------------------------------------------
def init_params(key, c_in, seq_len, c_out, n_hidden, feature_dim):
    d0 = c_in * seq_len + feature_dim * seq_len
    dims_in = [d0] + list(n_hidden[:-1])
    keys = iter(jax.random.split(key, 64))

    def lin_w(k, n_in, n_out):
        bound = 1.0 / math.sqrt(n_in)
        return jax.random.uniform(k, (n_in, n_out), jnp.float32, -bound, bound)

    def bn_params(n):
        return dict(
            gamma=jax.random.uniform(next(keys), (n,), jnp.float32, 0.5, 1.5),
            beta=jax.random.normal(next(keys), (n,), jnp.float32) * 0.1,
            mean=jax.random.normal(next(keys), (n,), jnp.float32) * 0.1,
            var=jax.random.uniform(next(keys), (n,), jnp.float32, 0.5, 1.5),
        )

    cb = 1.0 / math.sqrt(c_in)
    p = {
        "conv_w": jax.random.uniform(next(keys), (feature_dim, c_in),
                                     jnp.float32, -cb, cb),
        "conv_b": jax.random.uniform(next(keys), (feature_dim,),
                                     jnp.float32, -cb, cb),
        "bn0": bn_params(d0),
        "ws": [lin_w(next(keys), ni, no) for ni, no in zip(dims_in, n_hidden)],
        "bns": [bn_params(no) for no in n_hidden],
        "w_out": lin_w(next(keys), n_hidden[-1], c_out),
    }
    ob = 1.0 / math.sqrt(n_hidden[-1])
    p["b_out"] = jax.random.uniform(next(keys), (c_out,), jnp.float32, -ob, ob)
    return p


def mlp_reference(p, x, time, eps=1e-5):
    """Unfused f32 forward mirroring the PyTorch module (eval mode)."""
    B = x.shape[0]
    xf = x.reshape(B, -1)
    # Conv1d(c_in, F, 1) on time.permute(0,-1,-2): out[b,f,t] = sum_c w[f,c]*time[b,t,c]+b[f]
    feat = jnp.einsum("fc,btc->bft", p["conv_w"], time) + p["conv_b"][None, :, None]
    h = jnp.concatenate([xf, feat.reshape(B, -1)], axis=1)

    def bn(v, b):
        return (v - b["mean"]) / jnp.sqrt(b["var"] + eps) * b["gamma"] + b["beta"]

    h = bn(h, p["bn0"])
    for w, b in zip(p["ws"], p["bns"]):
        h = bn(jnp.maximum(h @ w, 0.0), b)
    return h @ p["w_out"] + p["b_out"][None, :]


# ---------------------------------------------------------------------------
# One-time parameter folding: conv + BN0 + transpose folded into layer-1
# weights; BN affines folded to scale/shift; weights cast to bf16; final
# weight/bias padded to a lane-dense 128-multiple output width.
# ---------------------------------------------------------------------------
def fold_params(p, c_in, seq_len, feature_dim, c_out, eps=1e-5,
                compute_dtype=jnp.bfloat16):
    T, C, F = seq_len, c_in, feature_dim

    def bn_affine(b):
        scale = b["gamma"] / jnp.sqrt(b["var"] + eps)
        shift = b["beta"] - b["mean"] * scale
        return scale, shift

    s0, sh0 = bn_affine(p["bn0"])                      # (D0,)
    W1 = p["ws"][0]                                    # (D0, H1)
    H1 = W1.shape[1]
    Dx = C * T
    W1x = W1[:Dx] * s0[:Dx, None]                      # x_flat contraction  (C*T, H1)
    W1f = W1[Dx:] * s0[Dx:, None]                      # feature part (F*T, H1), idx f*T+t
    W1f3 = W1f.reshape(F, T, H1)
    # time_flat (B, T*C) contraction: Wt[t*C+c, j] = sum_f conv_w[f,c] * W1f[f*T+t, j]
    Wt = jnp.einsum("fc,fth->tch", p["conv_w"], W1f3).reshape(T * C, H1)
    # bias: BN0 shift through W1 + conv bias through the scaled feature weights
    b1 = sh0 @ W1 + jnp.einsum("f,fth->h", p["conv_b"], W1f3)

    scales, shifts = [], []
    for b in p["bns"]:
        s, sh = bn_affine(b)
        scales.append(s[None, :])
        shifts.append(sh[None, :])

    n_pad = _round_up(max(c_out, 1), 128)
    w_out_p = jnp.zeros((p["w_out"].shape[0], n_pad), jnp.float32)
    w_out_p = w_out_p.at[:, :c_out].set(p["w_out"])
    b_out_p = jnp.zeros((1, n_pad), jnp.float32).at[:, :c_out].set(p["b_out"][None, :])

    cd = compute_dtype
    return {
        "w1x": W1x.astype(cd),
        "w1t": Wt.astype(cd),
        "b1": b1[None, :].astype(jnp.float32),
        "scales": scales,                               # f32 epilogue operands
        "shifts": shifts,
        "ws": [w.astype(cd) for w in p["ws"][1:]],
        "w_out": w_out_p.astype(cd),
        "b_out": b_out_p,
    }


# ---------------------------------------------------------------------------
# Forward pass: one pallas_call for the whole network.
# ---------------------------------------------------------------------------
def mlp_forward(folded, x, time, *, c_out):
    B = x.shape[0]
    if time.ndim == 2:
        time = time[:, None, :]
    x_flat = x.reshape(B, -1).astype(jnp.float32)       # (B, C*T), index c*T+t
    t_flat = time.reshape(B, -1).astype(jnp.float32)    # (B, T*C), index t*C+c

    Dx, H1 = folded["w1x"].shape
    Dt = folded["w1t"].shape[0]
    n_pad = folded["w_out"].shape[1]
    n_layers = len(folded["scales"])

    # Row tiling: pad B up to a multiple of 8 sublanes; tile at <=512 rows so
    # double-buffered activation tiles stay far below v7x's 64 MiB VMEM.
    tile_m = min(512, _round_up(B, 8))
    m_pad = _round_up(B, tile_m)
    if m_pad != B:
        x_flat = jnp.pad(x_flat, ((0, m_pad - B), (0, 0)))
        t_flat = jnp.pad(t_flat, ((0, m_pad - B), (0, 0)))

    operands = [x_flat, t_flat, folded["w1x"], folded["w1t"], folded["b1"],
                folded["scales"][0], folded["shifts"][0]]
    for w, s, sh in zip(folded["ws"], folded["scales"][1:], folded["shifts"][1:]):
        operands += [w, s, sh]
    operands += [folded["w_out"], folded["b_out"]]

    # Activations are M-tiled; all weights/affines are full-array VMEM-resident
    # blocks (constant index map -> fetched once, reused across the grid).
    in_specs = [pl.BlockSpec((tile_m, Dx), lambda i: (i, 0)),
                pl.BlockSpec((tile_m, Dt), lambda i: (i, 0))]
    for a in operands[2:]:
        in_specs.append(pl.BlockSpec(a.shape, lambda i: (0, 0)))

    # Cost estimate (advisory, helps XLA schedule the tiny glue around us).
    flops = 2 * m_pad * (Dx + Dt) * H1
    prev = H1
    for w in folded["ws"]:
        flops += 2 * m_pad * prev * w.shape[1]
        prev = w.shape[1]
    flops += 2 * m_pad * prev * n_pad
    bytes_accessed = sum(int(a.size) * a.dtype.itemsize for a in operands)
    bytes_accessed += m_pad * n_pad * 4

    out = pl.pallas_call(
        functools.partial(_mlp_fused_kernel, n_layers=n_layers),
        out_shape=jax.ShapeDtypeStruct((m_pad, n_pad), jnp.float32),
        grid_spec=pltpu.PrefetchScalarGridSpec(
            num_scalar_prefetch=0,
            grid=(m_pad // tile_m,),
            in_specs=in_specs,
            out_specs=pl.BlockSpec((tile_m, n_pad), lambda i: (i, 0)),
        ),
        compiler_params=pltpu.CompilerParams(
            dimension_semantics=("parallel",)),
        cost_estimate=pl.CostEstimate(flops=int(flops), transcendentals=0,
                                      bytes_accessed=int(bytes_accessed)),
    )(*operands)
    return out[:B, :c_out]


if __name__ == "__main__":
    key = jax.random.PRNGKey(0)
    B, c_in, seq_len, c_out = 2, 4, 16, 1
    n_hidden = [256, 128, 64]
    feature_dim = 64

    kp, kx, kt = jax.random.split(key, 3)
    raw = init_params(kp, c_in, seq_len, c_out, n_hidden, feature_dim)
    folded = fold_params(raw, c_in, seq_len, feature_dim, c_out)

    x = jax.random.normal(kx, (B, c_in, seq_len), jnp.float32)
    time = jax.random.normal(kt, (B, seq_len, c_in), jnp.float32)

    fwd = jax.jit(functools.partial(mlp_forward, c_out=c_out))
    out = jax.block_until_ready(fwd(folded, x, time))
    assert out.shape == (B, c_out), out.shape

    # Sanity check against the unfused f32 reference (bf16 weights -> loose tol).
    ref = mlp_reference(raw, x, time)
    err = float(jnp.max(jnp.abs(out - ref)))
    assert err < 1e-1, f"max abs err {err}"
    print("KERNEL_OK")
</pallas_src>

<mosaic_0001>
module attributes {stable_mosaic.version = 11 : i64} {
  func.func @_mlp_fused_kernel(%arg0: i32, %arg1: memref<8x64xf32, #tpu.memory_space<vmem>>, %arg2: memref<8x64xf32, #tpu.memory_space<vmem>>, %arg3: memref<64x256xbf16, #tpu.memory_space<vmem>>, %arg4: memref<64x256xbf16, #tpu.memory_space<vmem>>, %arg5: memref<1x256xf32, #tpu.memory_space<vmem>>, %arg6: memref<1x256xf32, #tpu.memory_space<vmem>>, %arg7: memref<1x256xf32, #tpu.memory_space<vmem>>, %arg8: memref<256x128xbf16, #tpu.memory_space<vmem>>, %arg9: memref<1x128xf32, #tpu.memory_space<vmem>>, %arg10: memref<1x128xf32, #tpu.memory_space<vmem>>, %arg11: memref<128x64xbf16, #tpu.memory_space<vmem>>, %arg12: memref<1x64xf32, #tpu.memory_space<vmem>>, %arg13: memref<1x64xf32, #tpu.memory_space<vmem>>, %arg14: memref<64x128xbf16, #tpu.memory_space<vmem>>, %arg15: memref<1x128xf32, #tpu.memory_space<vmem>>, %arg16: memref<8x128xf32, #tpu.memory_space<vmem>>) attributes {dimension_semantics = [#tpu.dimension_semantics<parallel>], iteration_bounds = array<i64: 1>, scalar_prefetch = 0 : i64, scratch_operands = 0 : i64, tpu.core_type = #tpu.core_type<tc>, window_params = [{transform_indices = @transform_0, window_bounds = array<i64: 8, 64>}, {transform_indices = @transform_1, window_bounds = array<i64: 8, 64>}, {pipeline_mode = #tpu.pipeline_mode<synchronous>, transform_indices = @transform_2, window_bounds = array<i64: 64, 256>}, {pipeline_mode = #tpu.pipeline_mode<synchronous>, transform_indices = @transform_3, window_bounds = array<i64: 64, 256>}, {pipeline_mode = #tpu.pipeline_mode<synchronous>, transform_indices = @transform_4, window_bounds = array<i64: 1, 256>}, {pipeline_mode = #tpu.pipeline_mode<synchronous>, transform_indices = @transform_5, window_bounds = array<i64: 1, 256>}, {pipeline_mode = #tpu.pipeline_mode<synchronous>, transform_indices = @transform_6, window_bounds = array<i64: 1, 256>}, {pipeline_mode = #tpu.pipeline_mode<synchronous>, transform_indices = @transform_7, window_bounds = array<i64: 256, 128>}, {pipeline_mode = #tpu.pipeline_mode<synchronous>, transform_indices = @transform_8, window_bounds = array<i64: 1, 128>}, {pipeline_mode = #tpu.pipeline_mode<synchronous>, transform_indices = @transform_9, window_bounds = array<i64: 1, 128>}, {pipeline_mode = #tpu.pipeline_mode<synchronous>, transform_indices = @transform_10, window_bounds = array<i64: 128, 64>}, {pipeline_mode = #tpu.pipeline_mode<synchronous>, transform_indices = @transform_11, window_bounds = array<i64: 1, 64>}, {pipeline_mode = #tpu.pipeline_mode<synchronous>, transform_indices = @transform_12, window_bounds = array<i64: 1, 64>}, {pipeline_mode = #tpu.pipeline_mode<synchronous>, transform_indices = @transform_13, window_bounds = array<i64: 64, 128>}, {pipeline_mode = #tpu.pipeline_mode<synchronous>, transform_indices = @transform_14, window_bounds = array<i64: 1, 128>}, {transform_indices = @transform_15, window_bounds = array<i64: 8, 128>}]} {
    %c0 = arith.constant 0 : index
    %c0_0 = arith.constant 0 : index
    %0 = vector.load %arg1[%c0, %c0_0] : memref<8x64xf32, #tpu.memory_space<vmem>>, vector<8x64xf32>
    %1 = arith.truncf %0 : vector<8x64xf32> to vector<8x64xbf16>
    %c0_1 = arith.constant 0 : index
    %c0_2 = arith.constant 0 : index
    %2 = vector.load %arg3[%c0_1, %c0_2] : memref<64x256xbf16, #tpu.memory_space<vmem>>, vector<64x256xbf16>
    %cst = arith.constant dense<0.000000e+00> : vector<8x256xf32>
    %3 = tpu.matmul %1, %2, %cst {dimension_numbers = #tpu.dot_dimension_numbers<[1], [0], [0], [1], [0, 0, 1, 1], [], []>} : vector<8x64xbf16>, vector<64x256xbf16>, vector<8x256xf32> -> vector<8x256xf32>
    %c0_3 = arith.constant 0 : index
    %c0_4 = arith.constant 0 : index
    %4 = vector.load %arg2[%c0_3, %c0_4] : memref<8x64xf32, #tpu.memory_space<vmem>>, vector<8x64xf32>
    %5 = arith.truncf %4 : vector<8x64xf32> to vector<8x64xbf16>
    %c0_5 = arith.constant 0 : index
    %c0_6 = arith.constant 0 : index
    %6 = vector.load %arg4[%c0_5, %c0_6] : memref<64x256xbf16, #tpu.memory_space<vmem>>, vector<64x256xbf16>
    %cst_7 = arith.constant dense<0.000000e+00> : vector<8x256xf32>
    %7 = tpu.matmul %5, %6, %cst_7 {dimension_numbers = #tpu.dot_dimension_numbers<[1], [0], [0], [1], [0, 0, 1, 1], [], []>} : vector<8x64xbf16>, vector<64x256xbf16>, vector<8x256xf32> -> vector<8x256xf32>
    %8 = arith.addf %3, %7 : vector<8x256xf32>
    %c0_8 = arith.constant 0 : index
    %c0_9 = arith.constant 0 : index
    %9 = vector.load %arg5[%c0_8, %c0_9] : memref<1x256xf32, #tpu.memory_space<vmem>>, vector<1x256xf32>
    %10 = vector.broadcast %9 : vector<1x256xf32> to vector<8x256xf32>
    %11 = arith.addf %8, %10 : vector<8x256xf32>
    %cst_10 = arith.constant 0.000000e+00 : f32
    %12 = vector.broadcast %cst_10 : f32 to vector<8x256xf32>
    %13 = arith.maximumf %11, %12 : vector<8x256xf32>
    %c0_11 = arith.constant 0 : index
    %c0_12 = arith.constant 0 : index
    %14 = vector.load %arg6[%c0_11, %c0_12] : memref<1x256xf32, #tpu.memory_space<vmem>>, vector<1x256xf32>
    %15 = vector.broadcast %14 : vector<1x256xf32> to vector<8x256xf32>
    %16 = arith.mulf %13, %15 : vector<8x256xf32>
    %c0_13 = arith.constant 0 : index
    %c0_14 = arith.constant 0 : index
    %17 = vector.load %arg7[%c0_13, %c0_14] : memref<1x256xf32, #tpu.memory_space<vmem>>, vector<1x256xf32>
    %18 = vector.broadcast %17 : vector<1x256xf32> to vector<8x256xf32>
    %19 = arith.addf %16, %18 : vector<8x256xf32>
    %20 = arith.truncf %19 : vector<8x256xf32> to vector<8x256xbf16>
    %c0_15 = arith.constant 0 : index
    %c0_16 = arith.constant 0 : index
    %21 = vector.load %arg8[%c0_15, %c0_16] : memref<256x128xbf16, #tpu.memory_space<vmem>>, vector<256x128xbf16>
    %cst_17 = arith.constant dense<0.000000e+00> : vector<8x128xf32>
    %22 = tpu.matmul %20, %21, %cst_17 {dimension_numbers = #tpu.dot_dimension_numbers<[1], [0], [0], [1], [0, 0, 1, 1], [], []>} : vector<8x256xbf16>, vector<256x128xbf16>, vector<8x128xf32> -> vector<8x128xf32>
    %cst_18 = arith.constant 0.000000e+00 : f32
    %23 = vector.broadcast %cst_18 : f32 to vector<8x128xf32>
    %24 = arith.maximumf %22, %23 : vector<8x128xf32>
    %c0_19 = arith.constant 0 : index
    %c0_20 = arith.constant 0 : index
    %25 = vector.load %arg9[%c0_19, %c0_20] : memref<1x128xf32, #tpu.memory_space<vmem>>, vector<1x128xf32>
    %26 = vector.broadcast %25 : vector<1x128xf32> to vector<8x128xf32>
    %27 = arith.mulf %24, %26 : vector<8x128xf32>
    %c0_21 = arith.constant 0 : index
    %c0_22 = arith.constant 0 : index
    %28 = vector.load %arg10[%c0_21, %c0_22] : memref<1x128xf32, #tpu.memory_space<vmem>>, vector<1x128xf32>
    %29 = vector.broadcast %28 : vector<1x128xf32> to vector<8x128xf32>
    %30 = arith.addf %27, %29 : vector<8x128xf32>
    %31 = arith.truncf %30 : vector<8x128xf32> to vector<8x128xbf16>
    %c0_23 = arith.constant 0 : index
    %c0_24 = arith.constant 0 : index
    %32 = vector.load %arg11[%c0_23, %c0_24] : memref<128x64xbf16, #tpu.memory_space<vmem>>, vector<128x64xbf16>
    %cst_25 = arith.constant dense<0.000000e+00> : vector<8x64xf32>
    %33 = tpu.matmul %31, %32, %cst_25 {dimension_numbers = #tpu.dot_dimension_numbers<[1], [0], [0], [1], [0, 0, 1, 1], [], []>} : vector<8x128xbf16>, vector<128x64xbf16>, vector<8x64xf32> -> vector<8x64xf32>
    %cst_26 = arith.constant 0.000000e+00 : f32
    %34 = vector.broadcast %cst_26 : f32 to vector<8x64xf32>
    %35 = arith.maximumf %33, %34 : vector<8x64xf32>
    %c0_27 = arith.constant 0 : index
    %c0_28 = arith.constant 0 : index
    %36 = vector.load %arg12[%c0_27, %c0_28] : memref<1x64xf32, #tpu.memory_space<vmem>>, vector<1x64xf32>
    %37 = vector.broadcast %36 : vector<1x64xf32> to vector<8x64xf32>
    %38 = arith.mulf %35, %37 : vector<8x64xf32>
    %c0_29 = arith.constant 0 : index
    %c0_30 = arith.constant 0 : index
    %39 = vector.load %arg13[%c0_29, %c0_30] : memref<1x64xf32, #tpu.memory_space<vmem>>, vector<1x64xf32>
    %40 = vector.broadcast %39 : vector<1x64xf32> to vector<8x64xf32>
    %41 = arith.addf %38, %40 : vector<8x64xf32>
    %42 = arith.truncf %41 : vector<8x64xf32> to vector<8x64xbf16>
    %c0_31 = arith.constant 0 : index
    %c0_32 = arith.constant 0 : index
    %43 = vector.load %arg14[%c0_31, %c0_32] : memref<64x128xbf16, #tpu.memory_space<vmem>>, vector<64x128xbf16>
    %cst_33 = arith.constant dense<0.000000e+00> : vector<8x128xf32>
    %44 = tpu.matmul %42, %43, %cst_33 {dimension_numbers = #tpu.dot_dimension_numbers<[1], [0], [0], [1], [0, 0, 1, 1], [], []>} : vector<8x64xbf16>, vector<64x128xbf16>, vector<8x128xf32> -> vector<8x128xf32>
    %c0_34 = arith.constant 0 : index
    %c0_35 = arith.constant 0 : index
    %45 = vector.load %arg15[%c0_34, %c0_35] : memref<1x128xf32, #tpu.memory_space<vmem>>, vector<1x128xf32>
    %46 = vector.broadcast %45 : vector<1x128xf32> to vector<8x128xf32>
    %47 = arith.addf %44, %46 : vector<8x128xf32>
    %c0_36 = arith.constant 0 : index
    %c0_37 = arith.constant 0 : index
    %48 = vector.load %arg16[%c0_36, %c0_37] : memref<8x128xf32, #tpu.memory_space<vmem>>, vector<8x128xf32>
    tpu.vector_store %arg16[%c0_36, %c0_37], %47 {strides = array<i32>} : memref<8x128xf32, #tpu.memory_space<vmem>>, vector<8x128xf32>,
    return
  }
  func.func @transform_0(%arg0: i32) -> (i32, i32) {
    %c0_i32 = arith.constant 0 : i32
    %c0_i32_0 = arith.constant 0 : i32
    return %arg0, %c0_i32 : i32, i32
  }
  func.func @transform_1(%arg0: i32) -> (i32, i32) {
    %c0_i32 = arith.constant 0 : i32
    %c0_i32_0 = arith.constant 0 : i32
    return %arg0, %c0_i32 : i32, i32
  }
  func.func @transform_2(%arg0: i32) -> (i32, i32) {
    %c0_i32 = arith.constant 0 : i32
    %c0_i32_0 = arith.constant 0 : i32
    %c0_i32_1 = arith.constant 0 : i32
    return %c0_i32, %c0_i32_0 : i32, i32
  }
  func.func @transform_3(%arg0: i32) -> (i32, i32) {
    %c0_i32 = arith.constant 0 : i32
    %c0_i32_0 = arith.constant 0 : i32
    %c0_i32_1 = arith.constant 0 : i32
    return %c0_i32, %c0_i32_0 : i32, i32
  }
  func.func @transform_4(%arg0: i32) -> (i32, i32) {
    %c0_i32 = arith.constant 0 : i32
    %c0_i32_0 = arith.constant 0 : i32
    %c0_i32_1 = arith.constant 0 : i32
    return %c0_i32, %c0_i32_0 : i32, i32
  }
  func.func @transform_5(%arg0: i32) -> (i32, i32) {
    %c0_i32 = arith.constant 0 : i32
    %c0_i32_0 = arith.constant 0 : i32
    %c0_i32_1 = arith.constant 0 : i32
    return %c0_i32, %c0_i32_0 : i32, i32
  }
  func.func @transform_6(%arg0: i32) -> (i32, i32) {
    %c0_i32 = arith.constant 0 : i32
    %c0_i32_0 = arith.constant 0 : i32
    %c0_i32_1 = arith.constant 0 : i32
    return %c0_i32, %c0_i32_0 : i32, i32
  }
  func.func @transform_7(%arg0: i32) -> (i32, i32) {
    %c0_i32 = arith.constant 0 : i32
    %c0_i32_0 = arith.constant 0 : i32
    %c0_i32_1 = arith.constant 0 : i32
    return %c0_i32, %c0_i32_0 : i32, i32
  }
  func.func @transform_8(%arg0: i32) -> (i32, i32) {
    %c0_i32 = arith.constant 0 : i32
    %c0_i32_0 = arith.constant 0 : i32
    %c0_i32_1 = arith.constant 0 : i32
    return %c0_i32, %c0_i32_0 : i32, i32
  }
  func.func @transform_9(%arg0: i32) -> (i32, i32) {
    %c0_i32 = arith.constant 0 : i32
    %c0_i32_0 = arith.constant 0 : i32
    %c0_i32_1 = arith.constant 0 : i32
    return %c0_i32, %c0_i32_0 : i32, i32
  }
  func.func @transform_10(%arg0: i32) -> (i32, i32) {
    %c0_i32 = arith.constant 0 : i32
    %c0_i32_0 = arith.constant 0 : i32
    %c0_i32_1 = arith.constant 0 : i32
    return %c0_i32, %c0_i32_0 : i32, i32
  }
  func.func @transform_11(%arg0: i32) -> (i32, i32) {
    %c0_i32 = arith.constant 0 : i32
    %c0_i32_0 = arith.constant 0 : i32
    %c0_i32_1 = arith.constant 0 : i32
    return %c0_i32, %c0_i32_0 : i32, i32
  }
  func.func @transform_12(%arg0: i32) -> (i32, i32) {
    %c0_i32 = arith.constant 0 : i32
    %c0_i32_0 = arith.constant 0 : i32
    %c0_i32_1 = arith.constant 0 : i32
    return %c0_i32, %c0_i32_0 : i32, i32
  }
  func.func @transform_13(%arg0: i32) -> (i32, i32) {
    %c0_i32 = arith.constant 0 : i32
    %c0_i32_0 = arith.constant 0 : i32
    %c0_i32_1 = arith.constant 0 : i32
    return %c0_i32, %c0_i32_0 : i32, i32
  }
  func.func @transform_14(%arg0: i32) -> (i32, i32) {
    %c0_i32 = arith.constant 0 : i32
    %c0_i32_0 = arith.constant 0 : i32
    %c0_i32_1 = arith.constant 0 : i32
    return %c0_i32, %c0_i32_0 : i32, i32
  }
  func.func @transform_15(%arg0: i32) -> (i32, i32) {
    %c0_i32 = arith.constant 0 : i32
    %c0_i32_0 = arith.constant 0 : i32
    return %arg0, %c0_i32 : i32, i32
  }
}

</mosaic_0001>

<bundles_post_ra>
// kernel: mlp_forward.1
= control target key start
LH: loop header
LB: loop body
LE: loop exit
PB: predicated region body
PF: predicated region fallthrough
CT: control target
= control target key end

     0   :  { %20 = vsyncpa [#allocation3], 0  ;;  %s1199_s0 = inlined_call_operand.vmem [shape: f32[8,64], index: 0, kind: input, shape index: {}]   ;;  %s1200_s1 = inlined_call_operand.vmem [shape: f32[8,64], index: 1, kind: input, shape index: {}]   ;;  %s1201_s2 = inlined_call_operand.vmem [shape: bf16[64,256], index: 2, kind: input, shape index: {}]   ;;  %s1202_s3 = inlined_call_operand.hbm [shape: bf16[64,256], index: 3, kind: input, shape index: {}]   ;;  %s1203_s4 = inlined_call_operand.vmem [shape: f32[1,256], index: 4, kind: input, shape index: {}]   ;;  %s1204_s5 = inlined_call_operand.vmem [shape: f32[1,256], index: 5, kind: input, shape index: {}]   ;;  %s1205_s6 = inlined_call_operand.vmem [shape: f32[1,256], index: 6, kind: input, shape index: {}]   ;;  %s1206_s7 = inlined_call_operand.vmem [shape: bf16[256,128], index: 7, kind: input, shape index: {}]   ;;  %s1207_s8 = inlined_call_operand.vmem [shape: f32[1,128], index: 8, kind: input, shape index: {}]   ;;  %s1208_s9 = inlined_call_operand.vmem [shape: f32[1,128], index: 9, kind: input, shape index: {}]   ;;  %s1209_s10 = inlined_call_operand.vmem [shape: bf16[128,64], index: 10, kind: input, shape index: {}]   ;;  %s1210_s11 = inlined_call_operand.vmem [shape: f32[1,64], index: 11, kind: input, shape index: {}]   ;;  %s1211_s12 = inlined_call_operand.vmem [shape: f32[1,64], index: 12, kind: input, shape index: {}]   ;;  %s1212_s13 = inlined_call_operand.hbm [shape: bf16[64,128], index: 13, kind: input, shape index: {}]   ;;  %s1213_s14 = inlined_call_operand.vmem [shape: f32[1,128], index: 14, kind: input, shape index: {}]   ;;  %s1214_s15 = inlined_call_operand.vmem [shape: f32[8,128], index: 15, kind: output, shape index: {}]  }
   0x1   :  { %21 = vsyncpa [#allocation5], 0  ;;  %s940_s18 = smov [#allocation2]   ;;  %s892_s22 = scalar_lea.hbm %s1202_s3, 1024 }
   0x2   :  { %s33_s19 = sshll.u32 %s940_s18, 4  ;;  %p893_p0 = scmp.ne.s32.totalorder %s1202_s3, %s892_s22  ;;  %s34_s19 = int_to_ptr.vmem [resolvable:$true] %s33_s19 }
   0x3   :  { %p896_p1 = scmp.lt.u32.totalorder %s892_s22, %s1202_s3 }
   0x5   :  { %p898_p2 = pnand %p896_p1, %p893_p0 }
   0x7   :  { %901 = shalt.err (!%p898_p2)
}
   0x8   :  { %s902_s27 = scalar_lea.vmem %s34_s19, 1024  ;;  %p907_p4 = scmp.lt.s32.totalorder %s34_s19, %s34_s19 }
   0x9   :  { %p903_p3 = scmp.ne.s32.totalorder %s34_s19, %s902_s27  ;;  %p908_p5 = scmp.lt.s32.totalorder %s902_s27, %s902_s27 }
   0xb   :  { %p909_p6 = por %p908_p5, %p907_p4 }
   0xd   :  { %p910_p7 = pnand %p909_p6, %p903_p3 }
   0xf   :  { %913 = shalt.err (!%p910_p7)
}
  0x10   :  { %s941_s28 = smov 128   ;;  %s942_s29 = smov 8  }
  0x11   :  { %39 = dma.hbm_to_vmem [thread:$0]  %s1202_s3, 1024, %s34_s19, [#allocation3], %s941_s28, %s941_s28, %s942_s29  }
  0x12   :  { %s943_s17 = smov [#allocation4]   ;;  %s914_s22 = scalar_lea.hbm %s1212_s13, 512 }
  0x13   :  { %s63_s18 = sshll.u32 %s943_s17, 4  ;;  %p915_p8 = scmp.ne.s32.totalorder %s1212_s13, %s914_s22  ;;  %s64_s18 = int_to_ptr.vmem [resolvable:$true] %s63_s18 }
  0x14   :  { %p918_p9 = scmp.lt.u32.totalorder %s914_s22, %s1212_s13 }
  0x16   :  { %p920_p10 = pnand %p918_p9, %p915_p8 }
  0x18   :  { %923 = shalt.err (!%p920_p10)
}
  0x19   :  { %s924_s27 = scalar_lea.vmem %s64_s18, 512  ;;  %p929_p12 = scmp.lt.s32.totalorder %s64_s18, %s64_s18 }
  0x1a   :  { %p925_p11 = scmp.ne.s32.totalorder %s64_s18, %s924_s27  ;;  %p930_p13 = scmp.lt.s32.totalorder %s924_s27, %s924_s27 }
  0x1c   :  { %p931_p0 = por %p930_p13, %p929_p12 }
  0x1e   :  { %p932_p1 = pnand %p931_p0, %p925_p11 }
  0x20   :  { %935 = shalt.err (!%p932_p1)
}
  0x21   :  { %s944_s3 = smov 64   ;;  %s945_s19 = smov 4  }
  0x22   :  { %69 = dma.hbm_to_vmem [thread:$0]  %s1212_s13, 512, %s64_s18, [#allocation5], %s944_s3, %s944_s3, %s945_s19  }
  0x23   :  { %936 = dma.done.wait [#allocation3], 1024  }
  0x24   :  { %937 = vsyncadd [#allocation3], 4294966272 }
  0x25   :  { %938 = dma.done.wait [#allocation5], 512  }
  0x26   :  { %939 = vsyncadd [#allocation5], 4294966784  ;;  %v946_v0 = vmov 0   ;;  %v840_v1 = vld [vmem:[#allocation2 + $0x4] ss:$8 sps:$4 sm:$0xff]   ;;  %vm139_vm0 = vcmask 523264   ;;  %v270_v43 = vlaneseq }
  0x27   :  { %175 = vmatprep.mubr.bf16.mxu0 %v946_v0  ;;  %259 = vmatprep.mubr.bf16.mxu1 %v946_v0  ;;  %v842_v2 = vld [vmem:[%s1201_s2 + $0x4] ss:$8 sps:$4 sm:$0xff]   ;;  %v844_v3 = vld [vmem:[#allocation2] ss:$8 sps:$4 sm:$0xff]   ;;  %v846_v5 = vld [vmem:[#allocation2 + $0x14] ss:$8 sps:$4 sm:$0xff]  }
  0x28   :  { %143 = vmatprep.subr.bf16.mxu0 %v840_v1  ;;  %v845_v4 = vld [vmem:[%s1201_s2] ss:$8 sps:$4 sm:$0xff]   ;;  %227 = vmatprep.subr.bf16.mxu1 %v842_v2  ;;  %v848_v6 = vld [vmem:[%s1201_s2 + $0x14] ss:$8 sps:$4 sm:$0xff]   ;;  %v850_v7 = vld [vmem:[#allocation2 + $0x10] ss:$8 sps:$4 sm:$0xff]  }
  0x29   :  { %144 = vmatpush1.bf16.msra.mxu0 %v844_v3  ;;  %228 = vmatpush1.bf16.msra.mxu1 %v845_v4  ;;  %v851_v8 = vld [vmem:[%s1201_s2 + $0x10] ss:$8 sps:$4 sm:$0xff]   ;;  %v852_v9 = vld [vmem:[#allocation2 + $0x24] ss:$8 sps:$4 sm:$0xff]   ;;  %v856_v11 = vld [vmem:[#allocation2 + $0x20] ss:$8 sps:$4 sm:$0xff]  }
  0x2a   :  { %145 = vmatprep.subr.bf16.mxu0 %v846_v5  ;;  %229 = vmatprep.subr.bf16.mxu1 %v848_v6  ;;  %v854_v10 = vld [vmem:[%s1201_s2 + $0x24] ss:$8 sps:$4 sm:$0xff]   ;;  %v857_v12 = vld [vmem:[%s1201_s2 + $0x20] ss:$8 sps:$4 sm:$0xff]   ;;  %v858_v13 = vld [vmem:[#allocation2 + $0x34] ss:$8 sps:$4 sm:$0xff]  }
  0x2b   :  { %v860_v14 = vld [vmem:[%s1201_s2 + $0x34] ss:$8 sps:$4 sm:$0xff]   ;;  %v862_v15 = vld [vmem:[#allocation2 + $0x30] ss:$8 sps:$4 sm:$0xff]   ;;  %v89_v17 = vld [vmem:[%s1200_s1] sm:$0xff]  ;;  %v947_v38 = vmov 0.0  }
  0x2c   :  { %v863_v16 = vld [vmem:[%s1201_s2 + $0x30] ss:$8 sps:$4 sm:$0xff]   ;;  %v79_v18 = vld [vmem:[%s1199_s0] sm:$0xff]  ;;  %v90_v20 = vpack.c.bf16 %v89_v17, %v89_v17  ;;  %v866_v23 = vld [vmem:[%s1206_s7 + $0x48] sm:$0xff]   ;;  %v271_v44 = vshrl.u32 %v270_v43, 7  ;;  %vm948_vm1 = vmmov 0  }
  0x2d   :  { %146 = vmatpush1.bf16.msra.mxu0 %v850_v7  ;;  %230 = vmatpush1.bf16.msra.mxu1 %v851_v8  ;;  %v864_v19 = vld [vmem:[%s1206_s7 + $0x40] sm:$0xff]   ;;  %v80_v21 = vpack.c.bf16 %v79_v18, %v79_v18  ;;  %v867_v24 = vld [vmem:[%s1206_s7 + $0x8] sm:$0xff]   ;;  %v868_v25 = vld [vmem:[%s1206_s7 + $0x50] sm:$0xff]  }
  0x2e   :  { %147 = vmatprep.subr.bf16.mxu0 %v852_v9  ;;  %231 = vmatprep.subr.bf16.mxu1 %v854_v10  ;;  %v865_v22 = vld [vmem:[%s1206_s7] sm:$0xff]   ;;  %v869_v26 = vld [vmem:[%s1206_s7 + $0x10] sm:$0xff]   ;;  %v870_v27 = vld [vmem:[%s1206_s7 + $0x58] sm:$0xff]   ;;  %v272_v45 = vsub.s32 0, %v271_v44  ;;  %v276_v47 = vsub.s32 1, %v271_v44 }
  0x2f   :  { %v871_v28 = vld [vmem:[%s1206_s7 + $0x18] sm:$0xff]   ;;  %v872_v29 = vld [vmem:[%s1206_s7 + $0x60] sm:$0xff]   ;;  %v874_v31 = vld [vmem:[%s1206_s7 + $0x68] sm:$0xff]  }
  0x30   :  { %v873_v30 = vld [vmem:[%s1206_s7 + $0x20] sm:$0xff]   ;;  %v875_v32 = vld [vmem:[%s1206_s7 + $0x28] sm:$0xff]   ;;  %v876_v33 = vld [vmem:[%s1206_s7 + $0x70] sm:$0xff]  }
  0x31   :  { %148 = vmatpush1.bf16.msra.mxu0 %v856_v11  ;;  %232 = vmatpush1.bf16.msra.mxu1 %v857_v12  ;;  %v877_v34 = vld [vmem:[%s1206_s7 + $0x30] sm:$0xff]   ;;  %v878_v35 = vld [vmem:[%s1206_s7 + $0x78] sm:$0xff]   ;;  %v880_v37 = vld [vmem:[%s1209_s10] sm:$0xff]  }
  0x32   :  { %149 = vmatprep.subr.bf16.mxu0 %v858_v13  ;;  %233 = vmatprep.subr.bf16.mxu1 %v860_v14  ;;  %v879_v36 = vld [vmem:[%s1206_s7 + $0x38] sm:$0xff]   ;;  %v881_v39 = vld [vmem:[%s1209_s10 + $0x8] sm:$0xff]   ;;  %v882_v40 = vld [vmem:[%s1209_s10 + $0x10] sm:$0xff]  }
  0x33   :  { %v883_v41 = vld [vmem:[%s1209_s10 + $0x18] sm:$0xff]   ;;  %v884_v42 = vld [vmem:[%s1209_s10 + $0x20] sm:$0xff]   ;;  %v885_v12 = vld [vmem:[%s1209_s10 + $0x28] sm:$0xff]  }
  0x34   :  { %v268_v46 = vld [vmem:[%s1203_s4] sm:$0x3]  ;;  %v886_v13 = vld [vmem:[%s1209_s10 + $0x30] sm:$0xff]   ;;  %v887_v14 = vld [vmem:[%s1209_s10 + $0x38] sm:$0xff]  }
  0x35   :  { %150 = vmatpush1.bf16.msra.mxu0 %v862_v15  ;;  %234 = vmatpush1.bf16.msra.mxu1 %v863_v16  ;;  %v273_v48 = vrot.slane %v268_v46, %v272_v45  ;;  %v284_v51 = vld [vmem:[%s1204_s5] sm:$0x3]  ;;  %v277_v52 = vrot.slane %v268_v46, %v276_v47  ;;  %v889_v16 = vld [vmem:[#allocation4 + $0x8] sm:$0xff]  }
  0x36   :  { %763 = vmatprep.subr.bf16.mxu0 %v864_v19  ;;  %799 = vmatprep.subr.bf16.mxu1 %v947_v38  ;;  %v298_v56 = vld [vmem:[%s1205_s6] sm:$0x3]  ;;  %v289_v61 = vrot.slane %v284_v51, %v272_v45  ;;  %v293_v1 = vrot.slane %v284_v51, %v276_v47 }
  0x37   :  { %v303_v3 = vrot.slane %v298_v56, %v272_v45  ;;  %v307_v5 = vrot.slane %v298_v56, %v276_v47  ;;  %v888_v15 = vld [vmem:[#allocation4] sm:$0xff]  }
  0x38   :  { %719 = vmatmul.mubr.msk.bf16.vlgmr.msra.gmra.mrb[0].mxu0 %vm139_vm0, %v90_v20  ;;  %728 = vmatmul.mubr.msk.bf16.vlgmr.msra.gmra.mrb[0].mxu1 %vm139_vm0, %v80_v21  ;;  %v745_v21 = vld [vmem:[%s1207_s8] ss:$0 sm:$0xff] }
  0x39   :  { %764 = vmatpush3.bf16.msra.mxu0 %v865_v22  ;;  %800 = vmatpush3.bf16.msra.mxu1 %v880_v37 }
  0x3a   :  { %765 = vmatprep.subr.bf16.mxu0 %v866_v23  ;;  %801 = vmatprep.subr.bf16.mxu1 %v947_v38 }
  0x3b   :  { %815 = vmatprep.mubr.msk.bf16.mxu1 %vm948_vm1, %v947_v38 }
  0x3d   :  { %766 = vmatpush3.bf16.msra.mxu0 %v867_v24  ;;  %802 = vmatpush3.bf16.msra.mxu1 %v881_v39  ;;  %v746_v24 = vld [vmem:[%s1208_s9] ss:$0 sm:$0xff] }
  0x3e   :  { %767 = vmatprep.subr.bf16.mxu0 %v868_v25  ;;  %803 = vmatprep.subr.bf16.mxu1 %v947_v38 }
  0x41   :  { %768 = vmatpush3.bf16.msra.mxu0 %v869_v26  ;;  %804 = vmatpush3.bf16.msra.mxu1 %v882_v40 }
  0x42   :  { %769 = vmatprep.subr.bf16.mxu0 %v870_v27  ;;  %805 = vmatprep.subr.bf16.mxu1 %v947_v38 }
  0x45   :  { %770 = vmatpush3.bf16.msra.mxu0 %v871_v28  ;;  %806 = vmatpush3.bf16.msra.mxu1 %v883_v41  ;;  %v890_v28 = vld [vmem:[#allocation4 + $0x10] sm:$0xff]  }
  0x46   :  { %771 = vmatprep.subr.bf16.mxu0 %v872_v29  ;;  %807 = vmatprep.subr.bf16.mxu1 %v947_v38  ;;  %v891_v29 = vld [vmem:[#allocation4 + $0x18] sm:$0xff]  }
  0x49   :  { %772 = vmatpush3.bf16.msra.mxu0 %v873_v30  ;;  %808 = vmatpush3.bf16.msra.mxu1 %v884_v42 }
  0x4a   :  { %773 = vmatprep.subr.bf16.mxu0 %v874_v31  ;;  %809 = vmatprep.subr.bf16.mxu1 %v947_v38  ;;  %v755_v31 = vld [vmem:[%s1210_s11] ss:$0 sm:$0xff] }
  0x4d   :  { %774 = vmatpush3.bf16.msra.mxu0 %v875_v32  ;;  %810 = vmatpush3.bf16.msra.mxu1 %v885_v12 }
  0x4e   :  { %775 = vmatprep.subr.bf16.mxu0 %v876_v33  ;;  %811 = vmatprep.subr.bf16.mxu1 %v947_v38 }
  0x51   :  { %776 = vmatpush3.bf16.msra.mxu0 %v877_v34  ;;  %812 = vmatpush3.bf16.msra.mxu1 %v886_v13  ;;  %v756_v34 = vld [vmem:[%s1211_s12] ss:$0 sm:$0xff] }
  0x52   :  { %777 = vmatprep.subr.bf16.mxu0 %v878_v35  ;;  %813 = vmatprep.subr.bf16.mxu1 %v947_v38 }
  0x55   :  { %778 = vmatpush3.bf16.msra.mxu0 %v879_v36  ;;  %814 = vmatpush3.bf16.msra.mxu1 %v887_v14 }
  0x56   :  { %819 = vmatprep.subr.bf16.mxu0 %v947_v38 }
 0x10b   :  { %v177_v49 = vpop.f32.mrb[0].mxu0  ;;  %v261_v50 = vpop.f32.mrb[0].mxu1 }
 0x10c   :  { %v262_v53 = vadd.f32 %v261_v50, %v177_v49  ;;  %v179_v54 = vpop.f32.mrb[1].mxu0  ;;  %v263_v55 = vpop.f32.mrb[1].mxu1 }
 0x10d   :  { %v264_v57 = vadd.f32 %v263_v55, %v179_v54  ;;  %v181_v58 = vpop.f32.mrb[2].mxu0  ;;  %v265_v59 = vpop.f32.mrb[2].mxu1 }
 0x10e   :  { %v280_v60 = vadd.f32 %v273_v48, %v262_v53  ;;  %v182_v62 = vpop.f32.mrb[3].mxu0  ;;  %v266_v63 = vpop.f32.mrb[3].mxu1 }
 0x10f   :  { %v281_v0 = vadd.f32 %v277_v52, %v264_v57 }
 0x110   :  { %v282_v2 = vmax.f32 %v280_v60, 0.0 }
 0x111   :  { %v283_v4 = vmax.f32 %v281_v0, 0.0 }
 0x112   :  { %v296_v6 = vmul.f32 %v289_v61, %v282_v2 }
 0x113   :  { %v297_v7 = vmul.f32 %v293_v1, %v283_v4 }
 0x114   :  { %v310_v8 = vadd.f32 %v303_v3, %v296_v6 }
 0x115   :  { %v311_v9 = vadd.f32 %v307_v5, %v297_v7 }
 0x116   :  { %v312_v11 = vpack.c.bf16 %v310_v8, %v310_v8 }
 0x117   :  { %v313_v10 = vpack.c.bf16 %v311_v9, %v311_v9 }
 0x119   :  { %474 = vmatprep.mubr.bf16.mxu0 %v313_v10 }
 0x11a   :  { %475 = vmatmul.mubr.bf16.vlgmr.msra.gmra.mrb[4].mxu0 %v312_v11 }
 0x11b   :  { %827 = vmatprep.mubr.msk.bf16.mxu0 %vm948_vm1, %v947_v38  ;;  %820 = vmatpush3.bf16.msra.mxu0 %v888_v15 }
 0x11c   :  { %821 = vmatprep.subr.bf16.mxu0 %v947_v38 }
 0x11f   :  { %822 = vmatpush3.bf16.msra.mxu0 %v889_v16 }
 0x120   :  { %823 = vmatprep.subr.bf16.mxu0 %v947_v38 }
 0x123   :  { %824 = vmatpush3.bf16.msra.mxu0 %v890_v28 }
 0x124   :  { %825 = vmatprep.subr.bf16.mxu0 %v947_v38  ;;  %v757_v38 = vld [vmem:[%s1213_s14] ss:$0 sm:$0xff] }
 0x127   :  { %826 = vmatpush3.bf16.msra.mxu0 %v891_v29 }
 0x1ed   :  { %v779_v17 = vpop.f32.mrb[4].mxu0 }
 0x1ee   :  { %v780_v18 = vpop.f32.mrb[5].mxu0 }
 0x1ef   :  { %v781_v19 = vadd.f32 %v780_v18, %v779_v17  ;;  %v782_v20 = vpop.f32.mrb[6].mxu0 }
 0x1f0   :  { %v783_v22 = vpop.f32.mrb[7].mxu0 }
 0x1f1   :  { %v482_v23 = vmax.f32 %v781_v19, 0.0 }
 0x1f3   :  { %v490_v25 = vmul.f32 %v745_v21, %v482_v23 }
 0x1f5   :  { %v498_v26 = vadd.f32 %v746_v24, %v490_v25 }
 0x1f7   :  { %v499_v27 = vpack.c.bf16 %v498_v26, %v498_v26 }
 0x1f9   :  { %816 = vmatmul.mubr.bf16.vlgmr.msra.gmra.mrb[4].mxu1 %v499_v27 }
 0x2cc   :  { %v598_v30 = vpop.f32.mrb[4].mxu1 }
 0x2cd   :  { %v604_v32 = vmax.f32 %v598_v30, 0.0  ;;  %v817_v33 = vpop.f32.mrb[5].mxu1 }
 0x2ce   :  { %v601_v35 = vpop.f32.mrb[6].mxu1 }
 0x2cf   :  { %v612_v36 = vmul.f32 %v755_v31, %v604_v32  ;;  %v818_v37 = vpop.f32.mrb[7].mxu1 }
 0x2d1   :  { %v620_v39 = vadd.f32 %v756_v34, %v612_v36 }
 0x2d3   :  { %v621_v40 = vpack.c.bf16 %v620_v39, %v620_v39 }
 0x2d5   :  { %828 = vmatmul.mubr.msk.bf16.vlgmr.msra.gmra.mrb[8].mxu0 %vm139_vm0, %v621_v40 }
 0x3a8   :  { %v698_v41 = vpop.f32.mrb[8].mxu0 }
 0x3a9   :  { %v699_v42 = vadd.f32 %v757_v38, %v698_v41  ;;  %v829_v43 = vpop.f32.mrb[9].mxu0 }
 0x3aa   :  { %v701_v44 = vpop.f32.mrb[10].mxu0 }
 0x3ab   :  { %704 = vst [vmem:[%s1214_s15] sm:$0xff] %v699_v42  ;;  %v830_v45 = vpop.f32.mrb[11].mxu0 }
 0x3ac   :  { %709 = vsyncpa [#allocation3], 1 }
 0x3ad   :  { %710 = vsyncpa [#allocation5], 1 }

</bundles_post_ra>
